<compile_context>
chip_gen: v6e
topology: v6e:2x2x1
jax: 0.10.0
libtpu: 0.0.40
codegen_flags: <defaults>
</compile_context>

<pallas_src>
import jax
import jax.numpy as jnp
from jax.experimental import pallas as pl
from jax.experimental.pallas import tpu as pltpu


def _round_up(x, m):
    return (x + m - 1) // m * m


def _pick_tile_m(M):
    """M-tile: 8-aligned, <=1024 rows, multiple of 256 for large M, and chosen
    so there are >=2 grid steps whenever M > 256 (v7x megacore sharding)."""
    if M <= 256:
        return _round_up(M, 8)
    if M <= 512:
        return _round_up((M + 1) // 2, 8)
    tm = (_round_up(M, 256) // 2) // 256 * 256
    return min(1024, max(256, tm))


def _patch_embed_kernel(p_ref, w_ref, b_ref, o_ref):
    # p_ref: (TM, Kp) bf16   w_ref: (Kp, Ep) bf16   b_ref: (1, Ep) f32
    # o_ref: (TM, Ep) out dtype.  f32 accumulation on the MXU + f32 bias add.
    acc = jnp.dot(p_ref[...], w_ref[...], preferred_element_type=jnp.float32)
    o_ref[...] = (acc + b_ref[...]).astype(o_ref.dtype)


def patch_embed(x, weight, bias, patch_size):
    """x: (B, C, H, W); weight: (E, C, ph, pw); bias: (E,). Returns (B, N, E)."""
    B, C, H, W = x.shape
    E = weight.shape[0]
    ph, pw = patch_size
    assert H % ph == 0 and W % pw == 0
    nH, nW = H // ph, W // pw
    num_patches = nH * nW

    # ---- glue (plain JAX): extract non-overlapping patches, bf16 feed ----
    # Pixel order inside each flattened patch is (C, ph, pw) — identical to how
    # Conv2d flattens its kernel.  Cast to bf16 *before* the transpose so the
    # materialized intermediate is half the bytes.
    x_lp = x.astype(jnp.bfloat16)
    xp = x_lp.reshape(B, C, nH, ph, nW, pw).transpose(0, 2, 4, 1, 3, 5)
    patches = xp.reshape(B * num_patches, C * ph * pw)
    M, K = patches.shape

    # ---- pad to TPU-friendly geometry ----
    Kp = _round_up(K, 128)          # lane-aligned reduction dim
    Ep = _round_up(E, 128)          # lane-dense output slab (unmasked vst)
    TM = _pick_tile_m(M)
    Mp = _round_up(M, TM)

    patches = jnp.pad(patches, ((0, Mp - M), (0, Kp - K)))
    w_t = jnp.pad(weight.astype(jnp.bfloat16).reshape(E, K).T,
                  ((0, Kp - K), (0, Ep - E)))
    b2d = jnp.pad(bias.astype(jnp.float32), (0, Ep - E)).reshape(1, Ep)

    out_dtype = x.dtype
    out_itemsize = jnp.zeros((), out_dtype).dtype.itemsize
    cost = pl.CostEstimate(
        flops=2 * Mp * Kp * Ep,
        bytes_accessed=Mp * Kp * 2 + Kp * Ep * 2 + Ep * 4 + Mp * Ep * out_itemsize,
        transcendentals=0,
    )

    out = pl.pallas_call(
        _patch_embed_kernel,
        out_shape=jax.ShapeDtypeStruct((Mp, Ep), out_dtype),
        grid_spec=pltpu.PrefetchScalarGridSpec(
            num_scalar_prefetch=0,
            grid=(Mp // TM,),
            in_specs=[
                pl.BlockSpec((TM, Kp), lambda i: (i, 0)),   # streamed patch tiles
                pl.BlockSpec((Kp, Ep), lambda i: (0, 0)),   # resident bf16 weight
                pl.BlockSpec((1, Ep), lambda i: (0, 0)),    # resident f32 bias
            ],
            out_specs=pl.BlockSpec((TM, Ep), lambda i: (i, 0)),
        ),
        compiler_params=pltpu.CompilerParams(
            dimension_semantics=("parallel",),        # v7x: shard M over 2 TCs
            vmem_limit_bytes=32 * 1024 * 1024,        # TM=1024 fits v5e too
        ),
        cost_estimate=cost,
    )(patches, w_t, b2d)

    # No-op when Mp==M and Ep==E (true for standard embed dims 192/384/768
    # when TM divides M); otherwise trims the zero/bias-padded rows/cols.
    return out[:M, :E].reshape(B, num_patches, E)


if __name__ == "__main__":
    # Small, consistent shapes: img 16x16, patch 4x4, 4 channels, embed 32.
    B, C, H, W = 2, 4, 16, 16
    patch = (4, 4)
    embed_dim = 32

    key = jax.random.PRNGKey(0)
    kx, kw, kb = jax.random.split(key, 3)

    x = jax.random.normal(kx, (B, C, H, W), dtype=jnp.float32)
    # Deterministic synthetic Conv2d parameters (shape as in nn.Conv2d).
    weight = jax.random.normal(kw, (embed_dim, C, patch[0], patch[1]),
                               dtype=jnp.float32) * 0.02
    bias = jax.random.normal(kb, (embed_dim,), dtype=jnp.float32) * 0.02

    fn = jax.jit(patch_embed, static_argnums=(3,))
    out = jax.block_until_ready(fn(x, weight, bias, patch))

    # Reference: lax conv (== PyTorch Conv2d semantics) with the same bf16
    # operand feed and f32 accumulation as the kernel.
    ref = jax.lax.conv_general_dilated(
        x.astype(jnp.bfloat16), weight.astype(jnp.bfloat16),
        window_strides=patch, padding="VALID",
        dimension_numbers=("NCHW", "OIHW", "NCHW"),
        preferred_element_type=jnp.float32,
    ) + bias.reshape(1, embed_dim, 1, 1)
    ref = ref.reshape(B, embed_dim, -1).transpose(0, 2, 1).astype(out.dtype)

    assert out.shape == (B, (H // patch[0]) * (W // patch[1]), embed_dim)
    # bf16 feeds: tolerance loosened vs. the old f32 1e-4 check.
    assert jnp.allclose(out, ref, atol=1e-2, rtol=1e-2), \
        float(jnp.max(jnp.abs(out - ref)))

    print("KERNEL_OK")
</pallas_src>

<mosaic_0001>
module attributes {stable_mosaic.version = 11 : i64} {
  func.func @_patch_embed_kernel(%arg0: i32, %arg1: memref<32x128xbf16, #tpu.memory_space<vmem>>, %arg2: memref<128x128xbf16, #tpu.memory_space<vmem>>, %arg3: memref<1x128xf32, #tpu.memory_space<vmem>>, %arg4: memref<32x128xf32, #tpu.memory_space<vmem>>) attributes {dimension_semantics = [#tpu.dimension_semantics<parallel>], iteration_bounds = array<i64: 1>, scalar_prefetch = 0 : i64, scratch_operands = 0 : i64, tpu.core_type = #tpu.core_type<tc>, window_params = [{transform_indices = @transform_0, window_bounds = array<i64: 32, 128>}, {pipeline_mode = #tpu.pipeline_mode<synchronous>, transform_indices = @transform_1, window_bounds = array<i64: 128, 128>}, {pipeline_mode = #tpu.pipeline_mode<synchronous>, transform_indices = @transform_2, window_bounds = array<i64: 1, 128>}, {transform_indices = @transform_3, window_bounds = array<i64: 32, 128>}]} {
    %c0 = arith.constant 0 : index
    %c0_0 = arith.constant 0 : index
    %0 = vector.load %arg1[%c0, %c0_0] : memref<32x128xbf16, #tpu.memory_space<vmem>>, vector<32x128xbf16>
    %c0_1 = arith.constant 0 : index
    %c0_2 = arith.constant 0 : index
    %1 = vector.load %arg2[%c0_1, %c0_2] : memref<128x128xbf16, #tpu.memory_space<vmem>>, vector<128x128xbf16>
    %cst = arith.constant dense<0.000000e+00> : vector<32x128xf32>
    %2 = tpu.matmul %0, %1, %cst {dimension_numbers = #tpu.dot_dimension_numbers<[1], [0], [0], [1], [0, 0, 1, 1], [], []>} : vector<32x128xbf16>, vector<128x128xbf16>, vector<32x128xf32> -> vector<32x128xf32>
    %c0_3 = arith.constant 0 : index
    %c0_4 = arith.constant 0 : index
    %3 = vector.load %arg3[%c0_3, %c0_4] : memref<1x128xf32, #tpu.memory_space<vmem>>, vector<1x128xf32>
    %4 = vector.broadcast %3 : vector<1x128xf32> to vector<32x128xf32>
    %5 = arith.addf %2, %4 : vector<32x128xf32>
    %c0_5 = arith.constant 0 : index
    %c0_6 = arith.constant 0 : index
    %6 = vector.load %arg4[%c0_5, %c0_6] : memref<32x128xf32, #tpu.memory_space<vmem>>, vector<32x128xf32>
    tpu.vector_store %arg4[%c0_5, %c0_6], %5 {strides = array<i32>} : memref<32x128xf32, #tpu.memory_space<vmem>>, vector<32x128xf32>,
    return
  }
  func.func @transform_0(%arg0: i32) -> (i32, i32) {
    %c0_i32 = arith.constant 0 : i32
    %c0_i32_0 = arith.constant 0 : i32
    return %arg0, %c0_i32 : i32, i32
  }
  func.func @transform_1(%arg0: i32) -> (i32, i32) {
    %c0_i32 = arith.constant 0 : i32
    %c0_i32_0 = arith.constant 0 : i32
    %c0_i32_1 = arith.constant 0 : i32
    return %c0_i32, %c0_i32_0 : i32, i32
  }
  func.func @transform_2(%arg0: i32) -> (i32, i32) {
    %c0_i32 = arith.constant 0 : i32
    %c0_i32_0 = arith.constant 0 : i32
    %c0_i32_1 = arith.constant 0 : i32
    return %c0_i32, %c0_i32_0 : i32, i32
  }
  func.func @transform_3(%arg0: i32) -> (i32, i32) {
    %c0_i32 = arith.constant 0 : i32
    %c0_i32_0 = arith.constant 0 : i32
    return %arg0, %c0_i32 : i32, i32
  }
}

</mosaic_0001>

<bundles_post_ra>
// kernel: patch_embed.1
= control target key start
LH: loop header
LB: loop body
LE: loop exit
PB: predicated region body
PF: predicated region fallthrough
CT: control target
= control target key end

     0   :  { %s307_s0 = inlined_call_operand.vmem [shape: bf16[32,128], index: 0, kind: input, shape index: {}]   ;;  %s308_s1 = inlined_call_operand.vmem [shape: bf16[128,128], index: 1, kind: input, shape index: {}]   ;;  %s309_s2 = inlined_call_operand.vmem [shape: f32[1,128], index: 2, kind: input, shape index: {}]   ;;  %s310_s3 = inlined_call_operand.hbm [shape: f32[32,128], index: 3, kind: output, shape index: {}]  }
   0x1   :  { %v216_v0 = vld [vmem:[%s308_s1 + $0x38] sm:$0xff]   ;;  %v217_v1 = vld [vmem:[%s308_s1 + $0x30] sm:$0xff]   ;;  %v218_v2 = vld [vmem:[%s308_s1 + $0x28] sm:$0xff]  }
   0x2   :  { %193 = vmatprep.subr.bf16.mxu0 %v216_v0  ;;  %v219_v3 = vld [vmem:[%s308_s1 + $0x20] sm:$0xff]  }
   0x3   :  { %194 = vmatpush3.bf16.msra.mxu0 %v216_v0  ;;  %v224_v4 = vld [vmem:[%s307_s0] sm:$0xff]  }
   0x4   :  { %195 = vmatprep.subr.bf16.mxu0 %v217_v1  ;;  %209 = vmatprep.mubr.bf16.mxu0 %v224_v4 }
   0x7   :  { %196 = vmatpush3.bf16.msra.mxu0 %v217_v1 }
   0x8   :  { %197 = vmatprep.subr.bf16.mxu0 %v218_v2 }
   0x9   :  { %8 = vsyncpa [#allocation3], 0  ;;  %v220_v5 = vld [vmem:[%s308_s1 + $0x18] sm:$0xff]   ;;  %v221_v6 = vld [vmem:[%s308_s1 + $0x10] sm:$0xff]   ;;  %s248_s7 = smov [#allocation2]  }
   0xa   :  { %v222_v7 = vld [vmem:[%s308_s1 + $0x8] sm:$0xff]   ;;  %v223_v8 = vld [vmem:[%s308_s1] sm:$0xff]   ;;  %s161_s8 = sshll.u32 %s248_s7, 4  ;;  %s162_s8 = int_to_ptr.vmem [resolvable:$true] %s161_s8 }
   0xb   :  { %198 = vmatpush3.bf16.msra.mxu0 %v218_v2  ;;  %v225_v9 = vld [vmem:[%s307_s0 + $0x8] sm:$0xff]   ;;  %v172_v10 = vld [vmem:[%s309_s2] ss:$0 sm:$0xff]  ;;  %s226_s0 = scalar_lea.vmem %s162_s8, 512  ;;  %p231_p1 = scmp.lt.s32.totalorder %s162_s8, %s162_s8 }
   0xc   :  { %199 = vmatprep.subr.bf16.mxu0 %v219_v3  ;;  %p227_p0 = scmp.ne.s32.totalorder %s162_s8, %s226_s0  ;;  %p232_p2 = scmp.lt.s32.totalorder %s226_s0, %s226_s0 }
   0xe   :  { %p233_p3 = por %p232_p2, %p231_p1 }
   0xf   :  { %200 = vmatpush3.bf16.msra.mxu0 %v219_v3 }
  0x10   :  { %201 = vmatprep.subr.bf16.mxu0 %v220_v5  ;;  %p234_p4 = pnand %p233_p3, %p227_p0 }
  0x13   :  { %202 = vmatpush3.bf16.msra.mxu0 %v220_v5 }
  0x14   :  { %203 = vmatprep.subr.bf16.mxu0 %v221_v6 }
  0x17   :  { %204 = vmatpush3.bf16.msra.mxu0 %v221_v6 }
  0x18   :  { %205 = vmatprep.subr.bf16.mxu0 %v222_v7 }
  0x1b   :  { %206 = vmatpush3.bf16.msra.mxu0 %v222_v7 }
  0x1c   :  { %207 = vmatprep.subr.bf16.mxu0 %v223_v8 }
  0x1f   :  { %208 = vmatpush3.bf16.msra.mxu0 %v223_v8 }
  0x22   :  { %210 = vmatmul.mubr.bf16.vlgmr.msra.gmra.mxu0 %v225_v9 }
  0xe2   :  { %v211_v11 = vpop.f32.mrf.mxu0 }
  0xe3   :  { %v146_v12 = vadd.f32 %v211_v11, %v172_v10 }
  0xe4   :  { %v137_v13 = vpop.f32.mrf.mxu0 }
  0xe5   :  { %154 = vst [vmem:[#allocation2 + $0x10] sm:$0xff] %v146_v12  ;;  %v138_v14 = vadd.f32 %v172_v10, %v137_v13 }
  0xe6   :  { %v212_v15 = vpop.f32.mrf.mxu0 }
  0xe7   :  { %152 = vst [vmem:[#allocation2] sm:$0xff] %v138_v14  ;;  %v149_v16 = vadd.f32 %v212_v15, %v172_v10 }
  0xe8   :  { %v140_v17 = vpop.f32.mrf.mxu0 }
  0xe9   :  { %155 = vst [vmem:[#allocation2 + $0x18] sm:$0xff] %v149_v16  ;;  %v141_v18 = vadd.f32 %v172_v10, %v140_v17 }
  0xeb   :  { %153 = vst [vmem:[#allocation2 + $0x8] sm:$0xff] %v141_v18 }
  0xec   :  { %237 = shalt.err (!%p234_p4)
}
  0xed   :  { %s249_s1 = smov 128   ;;  %s250_s2 = smov 8  }
  0xee   :  { %167 = dma.vmem_to_hbm [thread:$0]  %s162_s8, 512, %s310_s3, [#allocation3], %s249_s1, %s249_s1, %s250_s2  }
  0xef   :  { %246 = dma.done.wait [#allocation3], 512  }
  0xf0   :  { %247 = vsyncadd [#allocation3], 4294966784 }
  0xf1   :  { %171 = vsyncpa [#allocation3], 1 }

</bundles_post_ra>
